<compile_context>
chip_gen: v7x
topology: tpu7x:2x2x1
jax: 0.10.0
libtpu: 0.0.40
codegen_flags: <defaults>
</compile_context>

<pallas_src>
import numpy as np
import jax
import jax.numpy as jnp
from jax.experimental import pallas as pl
from jax.experimental.pallas import tpu as pltpu

_MAX_INFLIGHT = 8  # concurrent HBM->HBM copies (rolling semaphore window)


def _host_uniform_indices(t_total: int, num_samples: int):
    """Mirror torch: linspace(0, T-1, n) in f32 -> clamp -> .long() (trunc)."""
    idx_f = np.linspace(0.0, float(t_total - 1), num_samples, dtype=np.float32)
    idx = np.clip(idx_f, 0.0, float(t_total - 1)).astype(np.int64)
    return [int(i) for i in idx]


def _make_gather_kernel(indices):
    """Build a kernel that DMAs x[:, indices[t]] -> out[:, t] for all t."""
    n = len(indices)
    k = max(1, min(n, _MAX_INFLIGHT))

    def kernel(x_hbm, o_hbm, sems):
        def copy(t):
            # Static (trace-time) temporal indices -> fully static slices.
            return pltpu.make_async_copy(
                x_hbm.at[:, pl.ds(indices[t], 1)],   # (C, 1, H, W) source frame
                o_hbm.at[:, pl.ds(t, 1)],            # (C, 1, H, W) dest slot
                sems.at[t % k],
            )

        # Rolling window: keep up to k copies in flight; wait a slot before
        # reusing its semaphore.
        for t in range(n):
            if t >= k:
                copy(t - k).wait()
            copy(t).start()
        # Drain the tail.
        for t in range(max(0, n - k), n):
            copy(t).wait()

    return kernel, k


def uniform_temporal_subsample_pallas(x, num_samples, temporal_dim=-3):
    """x: (C, T, H, W) video tensor. Returns (C, num_samples, H, W)."""
    if x.ndim != 4 or temporal_dim % x.ndim != 1:
        # TODO(synk): only the (C, T, H, W) / temporal_dim=-3 layout of the
        # module's docstring is implemented.
        raise NotImplementedError("kernel assumes (C, T, H, W), temporal_dim=-3")
    C, T, H, W = x.shape

    indices = _host_uniform_indices(T, num_samples)
    kernel, k = _make_gather_kernel(indices)

    itemsize = int(jnp.dtype(x.dtype).itemsize)
    bytes_moved = 2 * num_samples * C * H * W * itemsize  # read + write

    return pl.pallas_call(
        kernel,
        out_shape=jax.ShapeDtypeStruct((C, num_samples, H, W), x.dtype),
        in_specs=[pl.BlockSpec(memory_space=pl.ANY)],    # raw HBM ref
        out_specs=pl.BlockSpec(memory_space=pl.ANY),     # raw HBM ref
        scratch_shapes=[pltpu.SemaphoreType.DMA((k,))],
        cost_estimate=pl.CostEstimate(
            flops=0, transcendentals=0, bytes_accessed=bytes_moved),
    )(x)


def _reference(x, num_samples):
    T = x.shape[1]
    idx = np.clip(np.linspace(0.0, T - 1, num_samples, dtype=np.float32),
                  0, T - 1).astype(np.int64)
    return np.asarray(x)[:, idx, :, :]


if __name__ == "__main__":
    key = jax.random.PRNGKey(0)

    # Test 1: typical small video, f32.
    C, T, H, W = 3, 16, 16, 128
    num_samples = 8
    x = jax.random.uniform(key, (C, T, H, W), dtype=jnp.float32,
                           minval=0.0, maxval=255.0)
    out = jax.block_until_ready(uniform_temporal_subsample_pallas(x, num_samples))
    assert out.shape == (C, num_samples, H, W)
    np.testing.assert_array_equal(np.asarray(out), _reference(x, num_samples))

    # Test 2: num_samples > T (duplicate indices) and bf16 dtype preservation.
    C2, T2, H2, W2 = 2, 4, 8, 128
    ns2 = 6
    x2 = jax.random.uniform(jax.random.PRNGKey(1), (C2, T2, H2, W2),
                            dtype=jnp.float32).astype(jnp.bfloat16)
    out2 = jax.block_until_ready(uniform_temporal_subsample_pallas(x2, ns2))
    assert out2.shape == (C2, ns2, H2, W2)
    assert out2.dtype == jnp.bfloat16
    np.testing.assert_array_equal(np.asarray(out2), _reference(x2, ns2))

    print("KERNEL_OK")
</pallas_src>

<mosaic_0001>
module attributes {stable_mosaic.version = 11 : i64} {
  func.func @kernel(%arg0: memref<3x16x16x128xf32, #tpu.memory_space<any>>, %arg1: memref<3x8x16x128xf32, #tpu.memory_space<any>>, %arg2: memref<8x!tpu.dma_semaphore, #tpu.memory_space<semaphore_mem>>) attributes {dimension_semantics = [], scalar_prefetch = 0 : i64, scratch_operands = 1 : i64, tpu.core_type = #tpu.core_type<tc>} {
    %c0_i32 = arith.constant 0 : i32
    %c0_i32_0 = arith.constant 0 : i32
    %c0_i32_1 = arith.constant 0 : i32
    %c0_i32_2 = arith.constant 0 : i32
    %c0_i32_3 = arith.constant 0 : i32
    %0 = tpu.memref_slice %arg0[%c0_i32_0, %c0_i32_1, %c0_i32_2, %c0_i32_3] : memref<3x16x16x128xf32, #tpu.memory_space<any>> -> memref<3x1x16x128xf32, #tpu.memory_space<any>>
    %c0_i32_4 = arith.constant 0 : i32
    %c0_i32_5 = arith.constant 0 : i32
    %c0_i32_6 = arith.constant 0 : i32
    %c0_i32_7 = arith.constant 0 : i32
    %1 = tpu.memref_slice %arg1[%c0_i32_4, %c0_i32_5, %c0_i32_6, %c0_i32_7] : memref<3x8x16x128xf32, #tpu.memory_space<any>> -> memref<3x1x16x128xf32, #tpu.memory_space<any>>
    %2 = tpu.memref_slice %arg2[%c0_i32] : memref<8x!tpu.dma_semaphore, #tpu.memory_space<semaphore_mem>> -> memref<1x!tpu.dma_semaphore, #tpu.memory_space<semaphore_mem>>
    %3 = tpu.memref_squeeze %2 : memref<1x!tpu.dma_semaphore, #tpu.memory_space<semaphore_mem>> -> memref<!tpu.dma_semaphore, #tpu.memory_space<semaphore_mem>>
    tpu.enqueue_dma source(%0 : memref<3x1x16x128xf32, #tpu.memory_space<any>>) target(%1 : memref<3x1x16x128xf32, #tpu.memory_space<any>>) target_semaphore(%3 : memref<!tpu.dma_semaphore, #tpu.memory_space<semaphore_mem>>)
    %c1_i32 = arith.constant 1 : i32
    %c0_i32_8 = arith.constant 0 : i32
    %c2_i32 = arith.constant 2 : i32
    %c0_i32_9 = arith.constant 0 : i32
    %c0_i32_10 = arith.constant 0 : i32
    %4 = tpu.memref_slice %arg0[%c0_i32_8, %c2_i32, %c0_i32_9, %c0_i32_10] : memref<3x16x16x128xf32, #tpu.memory_space<any>> -> memref<3x1x16x128xf32, #tpu.memory_space<any>>
    %c0_i32_11 = arith.constant 0 : i32
    %c1_i32_12 = arith.constant 1 : i32
    %c0_i32_13 = arith.constant 0 : i32
    %c0_i32_14 = arith.constant 0 : i32
    %5 = tpu.memref_slice %arg1[%c0_i32_11, %c1_i32_12, %c0_i32_13, %c0_i32_14] : memref<3x8x16x128xf32, #tpu.memory_space<any>> -> memref<3x1x16x128xf32, #tpu.memory_space<any>>
    %6 = tpu.memref_slice %arg2[%c1_i32] : memref<8x!tpu.dma_semaphore, #tpu.memory_space<semaphore_mem>> -> memref<1x!tpu.dma_semaphore, #tpu.memory_space<semaphore_mem>>
    %7 = tpu.memref_squeeze %6 : memref<1x!tpu.dma_semaphore, #tpu.memory_space<semaphore_mem>> -> memref<!tpu.dma_semaphore, #tpu.memory_space<semaphore_mem>>
    tpu.enqueue_dma source(%4 : memref<3x1x16x128xf32, #tpu.memory_space<any>>) target(%5 : memref<3x1x16x128xf32, #tpu.memory_space<any>>) target_semaphore(%7 : memref<!tpu.dma_semaphore, #tpu.memory_space<semaphore_mem>>)
    %c2_i32_15 = arith.constant 2 : i32
    %c0_i32_16 = arith.constant 0 : i32
    %c4_i32 = arith.constant 4 : i32
    %c0_i32_17 = arith.constant 0 : i32
    %c0_i32_18 = arith.constant 0 : i32
    %8 = tpu.memref_slice %arg0[%c0_i32_16, %c4_i32, %c0_i32_17, %c0_i32_18] : memref<3x16x16x128xf32, #tpu.memory_space<any>> -> memref<3x1x16x128xf32, #tpu.memory_space<any>>
    %c0_i32_19 = arith.constant 0 : i32
    %c2_i32_20 = arith.constant 2 : i32
    %c0_i32_21 = arith.constant 0 : i32
    %c0_i32_22 = arith.constant 0 : i32
    %9 = tpu.memref_slice %arg1[%c0_i32_19, %c2_i32_20, %c0_i32_21, %c0_i32_22] : memref<3x8x16x128xf32, #tpu.memory_space<any>> -> memref<3x1x16x128xf32, #tpu.memory_space<any>>
    %10 = tpu.memref_slice %arg2[%c2_i32_15] : memref<8x!tpu.dma_semaphore, #tpu.memory_space<semaphore_mem>> -> memref<1x!tpu.dma_semaphore, #tpu.memory_space<semaphore_mem>>
    %11 = tpu.memref_squeeze %10 : memref<1x!tpu.dma_semaphore, #tpu.memory_space<semaphore_mem>> -> memref<!tpu.dma_semaphore, #tpu.memory_space<semaphore_mem>>
    tpu.enqueue_dma source(%8 : memref<3x1x16x128xf32, #tpu.memory_space<any>>) target(%9 : memref<3x1x16x128xf32, #tpu.memory_space<any>>) target_semaphore(%11 : memref<!tpu.dma_semaphore, #tpu.memory_space<semaphore_mem>>)
    %c3_i32 = arith.constant 3 : i32
    %c0_i32_23 = arith.constant 0 : i32
    %c6_i32 = arith.constant 6 : i32
    %c0_i32_24 = arith.constant 0 : i32
    %c0_i32_25 = arith.constant 0 : i32
    %12 = tpu.memref_slice %arg0[%c0_i32_23, %c6_i32, %c0_i32_24, %c0_i32_25] : memref<3x16x16x128xf32, #tpu.memory_space<any>> -> memref<3x1x16x128xf32, #tpu.memory_space<any>>
    %c0_i32_26 = arith.constant 0 : i32
    %c3_i32_27 = arith.constant 3 : i32
    %c0_i32_28 = arith.constant 0 : i32
    %c0_i32_29 = arith.constant 0 : i32
    %13 = tpu.memref_slice %arg1[%c0_i32_26, %c3_i32_27, %c0_i32_28, %c0_i32_29] : memref<3x8x16x128xf32, #tpu.memory_space<any>> -> memref<3x1x16x128xf32, #tpu.memory_space<any>>
    %14 = tpu.memref_slice %arg2[%c3_i32] : memref<8x!tpu.dma_semaphore, #tpu.memory_space<semaphore_mem>> -> memref<1x!tpu.dma_semaphore, #tpu.memory_space<semaphore_mem>>
    %15 = tpu.memref_squeeze %14 : memref<1x!tpu.dma_semaphore, #tpu.memory_space<semaphore_mem>> -> memref<!tpu.dma_semaphore, #tpu.memory_space<semaphore_mem>>
    tpu.enqueue_dma source(%12 : memref<3x1x16x128xf32, #tpu.memory_space<any>>) target(%13 : memref<3x1x16x128xf32, #tpu.memory_space<any>>) target_semaphore(%15 : memref<!tpu.dma_semaphore, #tpu.memory_space<semaphore_mem>>)
    %c4_i32_30 = arith.constant 4 : i32
    %c0_i32_31 = arith.constant 0 : i32
    %c8_i32 = arith.constant 8 : i32
    %c0_i32_32 = arith.constant 0 : i32
    %c0_i32_33 = arith.constant 0 : i32
    %16 = tpu.memref_slice %arg0[%c0_i32_31, %c8_i32, %c0_i32_32, %c0_i32_33] : memref<3x16x16x128xf32, #tpu.memory_space<any>> -> memref<3x1x16x128xf32, #tpu.memory_space<any>>
    %c0_i32_34 = arith.constant 0 : i32
    %c4_i32_35 = arith.constant 4 : i32
    %c0_i32_36 = arith.constant 0 : i32
    %c0_i32_37 = arith.constant 0 : i32
    %17 = tpu.memref_slice %arg1[%c0_i32_34, %c4_i32_35, %c0_i32_36, %c0_i32_37] : memref<3x8x16x128xf32, #tpu.memory_space<any>> -> memref<3x1x16x128xf32, #tpu.memory_space<any>>
    %18 = tpu.memref_slice %arg2[%c4_i32_30] : memref<8x!tpu.dma_semaphore, #tpu.memory_space<semaphore_mem>> -> memref<1x!tpu.dma_semaphore, #tpu.memory_space<semaphore_mem>>
    %19 = tpu.memref_squeeze %18 : memref<1x!tpu.dma_semaphore, #tpu.memory_space<semaphore_mem>> -> memref<!tpu.dma_semaphore, #tpu.memory_space<semaphore_mem>>
    tpu.enqueue_dma source(%16 : memref<3x1x16x128xf32, #tpu.memory_space<any>>) target(%17 : memref<3x1x16x128xf32, #tpu.memory_space<any>>) target_semaphore(%19 : memref<!tpu.dma_semaphore, #tpu.memory_space<semaphore_mem>>)
    %c5_i32 = arith.constant 5 : i32
    %c0_i32_38 = arith.constant 0 : i32
    %c10_i32 = arith.constant 10 : i32
    %c0_i32_39 = arith.constant 0 : i32
    %c0_i32_40 = arith.constant 0 : i32
    %20 = tpu.memref_slice %arg0[%c0_i32_38, %c10_i32, %c0_i32_39, %c0_i32_40] : memref<3x16x16x128xf32, #tpu.memory_space<any>> -> memref<3x1x16x128xf32, #tpu.memory_space<any>>
    %c0_i32_41 = arith.constant 0 : i32
    %c5_i32_42 = arith.constant 5 : i32
    %c0_i32_43 = arith.constant 0 : i32
    %c0_i32_44 = arith.constant 0 : i32
    %21 = tpu.memref_slice %arg1[%c0_i32_41, %c5_i32_42, %c0_i32_43, %c0_i32_44] : memref<3x8x16x128xf32, #tpu.memory_space<any>> -> memref<3x1x16x128xf32, #tpu.memory_space<any>>
    %22 = tpu.memref_slice %arg2[%c5_i32] : memref<8x!tpu.dma_semaphore, #tpu.memory_space<semaphore_mem>> -> memref<1x!tpu.dma_semaphore, #tpu.memory_space<semaphore_mem>>
    %23 = tpu.memref_squeeze %22 : memref<1x!tpu.dma_semaphore, #tpu.memory_space<semaphore_mem>> -> memref<!tpu.dma_semaphore, #tpu.memory_space<semaphore_mem>>
    tpu.enqueue_dma source(%20 : memref<3x1x16x128xf32, #tpu.memory_space<any>>) target(%21 : memref<3x1x16x128xf32, #tpu.memory_space<any>>) target_semaphore(%23 : memref<!tpu.dma_semaphore, #tpu.memory_space<semaphore_mem>>)
    %c6_i32_45 = arith.constant 6 : i32
    %c0_i32_46 = arith.constant 0 : i32
    %c12_i32 = arith.constant 12 : i32
    %c0_i32_47 = arith.constant 0 : i32
    %c0_i32_48 = arith.constant 0 : i32
    %24 = tpu.memref_slice %arg0[%c0_i32_46, %c12_i32, %c0_i32_47, %c0_i32_48] : memref<3x16x16x128xf32, #tpu.memory_space<any>> -> memref<3x1x16x128xf32, #tpu.memory_space<any>>
    %c0_i32_49 = arith.constant 0 : i32
    %c6_i32_50 = arith.constant 6 : i32
    %c0_i32_51 = arith.constant 0 : i32
    %c0_i32_52 = arith.constant 0 : i32
    %25 = tpu.memref_slice %arg1[%c0_i32_49, %c6_i32_50, %c0_i32_51, %c0_i32_52] : memref<3x8x16x128xf32, #tpu.memory_space<any>> -> memref<3x1x16x128xf32, #tpu.memory_space<any>>
    %26 = tpu.memref_slice %arg2[%c6_i32_45] : memref<8x!tpu.dma_semaphore, #tpu.memory_space<semaphore_mem>> -> memref<1x!tpu.dma_semaphore, #tpu.memory_space<semaphore_mem>>
    %27 = tpu.memref_squeeze %26 : memref<1x!tpu.dma_semaphore, #tpu.memory_space<semaphore_mem>> -> memref<!tpu.dma_semaphore, #tpu.memory_space<semaphore_mem>>
    tpu.enqueue_dma source(%24 : memref<3x1x16x128xf32, #tpu.memory_space<any>>) target(%25 : memref<3x1x16x128xf32, #tpu.memory_space<any>>) target_semaphore(%27 : memref<!tpu.dma_semaphore, #tpu.memory_space<semaphore_mem>>)
    %c7_i32 = arith.constant 7 : i32
    %c0_i32_53 = arith.constant 0 : i32
    %c15_i32 = arith.constant 15 : i32
    %c0_i32_54 = arith.constant 0 : i32
    %c0_i32_55 = arith.constant 0 : i32
    %28 = tpu.memref_slice %arg0[%c0_i32_53, %c15_i32, %c0_i32_54, %c0_i32_55] : memref<3x16x16x128xf32, #tpu.memory_space<any>> -> memref<3x1x16x128xf32, #tpu.memory_space<any>>
    %c0_i32_56 = arith.constant 0 : i32
    %c7_i32_57 = arith.constant 7 : i32
    %c0_i32_58 = arith.constant 0 : i32
    %c0_i32_59 = arith.constant 0 : i32
    %29 = tpu.memref_slice %arg1[%c0_i32_56, %c7_i32_57, %c0_i32_58, %c0_i32_59] : memref<3x8x16x128xf32, #tpu.memory_space<any>> -> memref<3x1x16x128xf32, #tpu.memory_space<any>>
    %30 = tpu.memref_slice %arg2[%c7_i32] : memref<8x!tpu.dma_semaphore, #tpu.memory_space<semaphore_mem>> -> memref<1x!tpu.dma_semaphore, #tpu.memory_space<semaphore_mem>>
    %31 = tpu.memref_squeeze %30 : memref<1x!tpu.dma_semaphore, #tpu.memory_space<semaphore_mem>> -> memref<!tpu.dma_semaphore, #tpu.memory_space<semaphore_mem>>
    tpu.enqueue_dma source(%28 : memref<3x1x16x128xf32, #tpu.memory_space<any>>) target(%29 : memref<3x1x16x128xf32, #tpu.memory_space<any>>) target_semaphore(%31 : memref<!tpu.dma_semaphore, #tpu.memory_space<semaphore_mem>>)
    %c0_i32_60 = arith.constant 0 : i32
    %c0_i32_61 = arith.constant 0 : i32
    %c0_i32_62 = arith.constant 0 : i32
    %c0_i32_63 = arith.constant 0 : i32
    %c0_i32_64 = arith.constant 0 : i32
    %32 = tpu.memref_slice %arg0[%c0_i32_61, %c0_i32_62, %c0_i32_63, %c0_i32_64] : memref<3x16x16x128xf32, #tpu.memory_space<any>> -> memref<3x1x16x128xf32, #tpu.memory_space<any>>
    %c0_i32_65 = arith.constant 0 : i32
    %c0_i32_66 = arith.constant 0 : i32
    %c0_i32_67 = arith.constant 0 : i32
    %c0_i32_68 = arith.constant 0 : i32
    %33 = tpu.memref_slice %arg1[%c0_i32_65, %c0_i32_66, %c0_i32_67, %c0_i32_68] : memref<3x8x16x128xf32, #tpu.memory_space<any>> -> memref<3x1x16x128xf32, #tpu.memory_space<any>>
    %34 = tpu.memref_slice %arg2[%c0_i32_60] : memref<8x!tpu.dma_semaphore, #tpu.memory_space<semaphore_mem>> -> memref<1x!tpu.dma_semaphore, #tpu.memory_space<semaphore_mem>>
    %35 = tpu.memref_squeeze %34 : memref<1x!tpu.dma_semaphore, #tpu.memory_space<semaphore_mem>> -> memref<!tpu.dma_semaphore, #tpu.memory_space<semaphore_mem>>
    tpu.wait_dma2 semaphore(%35 : memref<!tpu.dma_semaphore, #tpu.memory_space<semaphore_mem>>) src(%32 : memref<3x1x16x128xf32, #tpu.memory_space<any>>) dst(%33 : memref<3x1x16x128xf32, #tpu.memory_space<any>>)
    %c1_i32_69 = arith.constant 1 : i32
    %c0_i32_70 = arith.constant 0 : i32
    %c2_i32_71 = arith.constant 2 : i32
    %c0_i32_72 = arith.constant 0 : i32
    %c0_i32_73 = arith.constant 0 : i32
    %36 = tpu.memref_slice %arg0[%c0_i32_70, %c2_i32_71, %c0_i32_72, %c0_i32_73] : memref<3x16x16x128xf32, #tpu.memory_space<any>> -> memref<3x1x16x128xf32, #tpu.memory_space<any>>
    %c0_i32_74 = arith.constant 0 : i32
    %c1_i32_75 = arith.constant 1 : i32
    %c0_i32_76 = arith.constant 0 : i32
    %c0_i32_77 = arith.constant 0 : i32
    %37 = tpu.memref_slice %arg1[%c0_i32_74, %c1_i32_75, %c0_i32_76, %c0_i32_77] : memref<3x8x16x128xf32, #tpu.memory_space<any>> -> memref<3x1x16x128xf32, #tpu.memory_space<any>>
    %38 = tpu.memref_slice %arg2[%c1_i32_69] : memref<8x!tpu.dma_semaphore, #tpu.memory_space<semaphore_mem>> -> memref<1x!tpu.dma_semaphore, #tpu.memory_space<semaphore_mem>>
    %39 = tpu.memref_squeeze %38 : memref<1x!tpu.dma_semaphore, #tpu.memory_space<semaphore_mem>> -> memref<!tpu.dma_semaphore, #tpu.memory_space<semaphore_mem>>
    tpu.wait_dma2 semaphore(%39 : memref<!tpu.dma_semaphore, #tpu.memory_space<semaphore_mem>>) src(%36 : memref<3x1x16x128xf32, #tpu.memory_space<any>>) dst(%37 : memref<3x1x16x128xf32, #tpu.memory_space<any>>)
    %c2_i32_78 = arith.constant 2 : i32
    %c0_i32_79 = arith.constant 0 : i32
    %c4_i32_80 = arith.constant 4 : i32
    %c0_i32_81 = arith.constant 0 : i32
    %c0_i32_82 = arith.constant 0 : i32
    %40 = tpu.memref_slice %arg0[%c0_i32_79, %c4_i32_80, %c0_i32_81, %c0_i32_82] : memref<3x16x16x128xf32, #tpu.memory_space<any>> -> memref<3x1x16x128xf32, #tpu.memory_space<any>>
    %c0_i32_83 = arith.constant 0 : i32
    %c2_i32_84 = arith.constant 2 : i32
    %c0_i32_85 = arith.constant 0 : i32
    %c0_i32_86 = arith.constant 0 : i32
    %41 = tpu.memref_slice %arg1[%c0_i32_83, %c2_i32_84, %c0_i32_85, %c0_i32_86] : memref<3x8x16x128xf32, #tpu.memory_space<any>> -> memref<3x1x16x128xf32, #tpu.memory_space<any>>
    %42 = tpu.memref_slice %arg2[%c2_i32_78] : memref<8x!tpu.dma_semaphore, #tpu.memory_space<semaphore_mem>> -> memref<1x!tpu.dma_semaphore, #tpu.memory_space<semaphore_mem>>
    %43 = tpu.memref_squeeze %42 : memref<1x!tpu.dma_semaphore, #tpu.memory_space<semaphore_mem>> -> memref<!tpu.dma_semaphore, #tpu.memory_space<semaphore_mem>>
    tpu.wait_dma2 semaphore(%43 : memref<!tpu.dma_semaphore, #tpu.memory_space<semaphore_mem>>) src(%40 : memref<3x1x16x128xf32, #tpu.memory_space<any>>) dst(%41 : memref<3x1x16x128xf32, #tpu.memory_space<any>>)
    %c3_i32_87 = arith.constant 3 : i32
    %c0_i32_88 = arith.constant 0 : i32
    %c6_i32_89 = arith.constant 6 : i32
    %c0_i32_90 = arith.constant 0 : i32
    %c0_i32_91 = arith.constant 0 : i32
    %44 = tpu.memref_slice %arg0[%c0_i32_88, %c6_i32_89, %c0_i32_90, %c0_i32_91] : memref<3x16x16x128xf32, #tpu.memory_space<any>> -> memref<3x1x16x128xf32, #tpu.memory_space<any>>
    %c0_i32_92 = arith.constant 0 : i32
    %c3_i32_93 = arith.constant 3 : i32
    %c0_i32_94 = arith.constant 0 : i32
    %c0_i32_95 = arith.constant 0 : i32
    %45 = tpu.memref_slice %arg1[%c0_i32_92, %c3_i32_93, %c0_i32_94, %c0_i32_95] : memref<3x8x16x128xf32, #tpu.memory_space<any>> -> memref<3x1x16x128xf32, #tpu.memory_space<any>>
    %46 = tpu.memref_slice %arg2[%c3_i32_87] : memref<8x!tpu.dma_semaphore, #tpu.memory_space<semaphore_mem>> -> memref<1x!tpu.dma_semaphore, #tpu.memory_space<semaphore_mem>>
    %47 = tpu.memref_squeeze %46 : memref<1x!tpu.dma_semaphore, #tpu.memory_space<semaphore_mem>> -> memref<!tpu.dma_semaphore, #tpu.memory_space<semaphore_mem>>
    tpu.wait_dma2 semaphore(%47 : memref<!tpu.dma_semaphore, #tpu.memory_space<semaphore_mem>>) src(%44 : memref<3x1x16x128xf32, #tpu.memory_space<any>>) dst(%45 : memref<3x1x16x128xf32, #tpu.memory_space<any>>)
    %c4_i32_96 = arith.constant 4 : i32
    %c0_i32_97 = arith.constant 0 : i32
    %c8_i32_98 = arith.constant 8 : i32
    %c0_i32_99 = arith.constant 0 : i32
    %c0_i32_100 = arith.constant 0 : i32
    %48 = tpu.memref_slice %arg0[%c0_i32_97, %c8_i32_98, %c0_i32_99, %c0_i32_100] : memref<3x16x16x128xf32, #tpu.memory_space<any>> -> memref<3x1x16x128xf32, #tpu.memory_space<any>>
    %c0_i32_101 = arith.constant 0 : i32
    %c4_i32_102 = arith.constant 4 : i32
    %c0_i32_103 = arith.constant 0 : i32
    %c0_i32_104 = arith.constant 0 : i32
    %49 = tpu.memref_slice %arg1[%c0_i32_101, %c4_i32_102, %c0_i32_103, %c0_i32_104] : memref<3x8x16x128xf32, #tpu.memory_space<any>> -> memref<3x1x16x128xf32, #tpu.memory_space<any>>
    %50 = tpu.memref_slice %arg2[%c4_i32_96] : memref<8x!tpu.dma_semaphore, #tpu.memory_space<semaphore_mem>> -> memref<1x!tpu.dma_semaphore, #tpu.memory_space<semaphore_mem>>
    %51 = tpu.memref_squeeze %50 : memref<1x!tpu.dma_semaphore, #tpu.memory_space<semaphore_mem>> -> memref<!tpu.dma_semaphore, #tpu.memory_space<semaphore_mem>>
    tpu.wait_dma2 semaphore(%51 : memref<!tpu.dma_semaphore, #tpu.memory_space<semaphore_mem>>) src(%48 : memref<3x1x16x128xf32, #tpu.memory_space<any>>) dst(%49 : memref<3x1x16x128xf32, #tpu.memory_space<any>>)
    %c5_i32_105 = arith.constant 5 : i32
    %c0_i32_106 = arith.constant 0 : i32
    %c10_i32_107 = arith.constant 10 : i32
    %c0_i32_108 = arith.constant 0 : i32
    %c0_i32_109 = arith.constant 0 : i32
    %52 = tpu.memref_slice %arg0[%c0_i32_106, %c10_i32_107, %c0_i32_108, %c0_i32_109] : memref<3x16x16x128xf32, #tpu.memory_space<any>> -> memref<3x1x16x128xf32, #tpu.memory_space<any>>
    %c0_i32_110 = arith.constant 0 : i32
    %c5_i32_111 = arith.constant 5 : i32
    %c0_i32_112 = arith.constant 0 : i32
    %c0_i32_113 = arith.constant 0 : i32
    %53 = tpu.memref_slice %arg1[%c0_i32_110, %c5_i32_111, %c0_i32_112, %c0_i32_113] : memref<3x8x16x128xf32, #tpu.memory_space<any>> -> memref<3x1x16x128xf32, #tpu.memory_space<any>>
    %54 = tpu.memref_slice %arg2[%c5_i32_105] : memref<8x!tpu.dma_semaphore, #tpu.memory_space<semaphore_mem>> -> memref<1x!tpu.dma_semaphore, #tpu.memory_space<semaphore_mem>>
    %55 = tpu.memref_squeeze %54 : memref<1x!tpu.dma_semaphore, #tpu.memory_space<semaphore_mem>> -> memref<!tpu.dma_semaphore, #tpu.memory_space<semaphore_mem>>
    tpu.wait_dma2 semaphore(%55 : memref<!tpu.dma_semaphore, #tpu.memory_space<semaphore_mem>>) src(%52 : memref<3x1x16x128xf32, #tpu.memory_space<any>>) dst(%53 : memref<3x1x16x128xf32, #tpu.memory_space<any>>)
    %c6_i32_114 = arith.constant 6 : i32
    %c0_i32_115 = arith.constant 0 : i32
    %c12_i32_116 = arith.constant 12 : i32
    %c0_i32_117 = arith.constant 0 : i32
    %c0_i32_118 = arith.constant 0 : i32
    %56 = tpu.memref_slice %arg0[%c0_i32_115, %c12_i32_116, %c0_i32_117, %c0_i32_118] : memref<3x16x16x128xf32, #tpu.memory_space<any>> -> memref<3x1x16x128xf32, #tpu.memory_space<any>>
    %c0_i32_119 = arith.constant 0 : i32
    %c6_i32_120 = arith.constant 6 : i32
    %c0_i32_121 = arith.constant 0 : i32
    %c0_i32_122 = arith.constant 0 : i32
    %57 = tpu.memref_slice %arg1[%c0_i32_119, %c6_i32_120, %c0_i32_121, %c0_i32_122] : memref<3x8x16x128xf32, #tpu.memory_space<any>> -> memref<3x1x16x128xf32, #tpu.memory_space<any>>
    %58 = tpu.memref_slice %arg2[%c6_i32_114] : memref<8x!tpu.dma_semaphore, #tpu.memory_space<semaphore_mem>> -> memref<1x!tpu.dma_semaphore, #tpu.memory_space<semaphore_mem>>
    %59 = tpu.memref_squeeze %58 : memref<1x!tpu.dma_semaphore, #tpu.memory_space<semaphore_mem>> -> memref<!tpu.dma_semaphore, #tpu.memory_space<semaphore_mem>>
    tpu.wait_dma2 semaphore(%59 : memref<!tpu.dma_semaphore, #tpu.memory_space<semaphore_mem>>) src(%56 : memref<3x1x16x128xf32, #tpu.memory_space<any>>) dst(%57 : memref<3x1x16x128xf32, #tpu.memory_space<any>>)
    %c7_i32_123 = arith.constant 7 : i32
    %c0_i32_124 = arith.constant 0 : i32
    %c15_i32_125 = arith.constant 15 : i32
    %c0_i32_126 = arith.constant 0 : i32
    %c0_i32_127 = arith.constant 0 : i32
    %60 = tpu.memref_slice %arg0[%c0_i32_124, %c15_i32_125, %c0_i32_126, %c0_i32_127] : memref<3x16x16x128xf32, #tpu.memory_space<any>> -> memref<3x1x16x128xf32, #tpu.memory_space<any>>
    %c0_i32_128 = arith.constant 0 : i32
    %c7_i32_129 = arith.constant 7 : i32
    %c0_i32_130 = arith.constant 0 : i32
    %c0_i32_131 = arith.constant 0 : i32
    %61 = tpu.memref_slice %arg1[%c0_i32_128, %c7_i32_129, %c0_i32_130, %c0_i32_131] : memref<3x8x16x128xf32, #tpu.memory_space<any>> -> memref<3x1x16x128xf32, #tpu.memory_space<any>>
    %62 = tpu.memref_slice %arg2[%c7_i32_123] : memref<8x!tpu.dma_semaphore, #tpu.memory_space<semaphore_mem>> -> memref<1x!tpu.dma_semaphore, #tpu.memory_space<semaphore_mem>>
    %63 = tpu.memref_squeeze %62 : memref<1x!tpu.dma_semaphore, #tpu.memory_space<semaphore_mem>> -> memref<!tpu.dma_semaphore, #tpu.memory_space<semaphore_mem>>
    tpu.wait_dma2 semaphore(%63 : memref<!tpu.dma_semaphore, #tpu.memory_space<semaphore_mem>>) src(%60 : memref<3x1x16x128xf32, #tpu.memory_space<any>>) dst(%61 : memref<3x1x16x128xf32, #tpu.memory_space<any>>)
    return
  }
}

</mosaic_0001>

<bundles_post_ra>
// kernel: tpu_custom_call.1
= control target key start
LH: loop header
LB: loop body
LE: loop exit
PB: predicated region body
PF: predicated region fallthrough
CT: control target
= control target key end

     0   :  { %s297_s6 = smov 4096   ;;  %s298_s7 = smov 2048   ;;  %s407_s0 = inlined_call_operand.hbm [shape: f32[3,16,16,128], index: 0, kind: input, shape index: {}]   ;;  %s408_s1 = inlined_call_operand.hbm [shape: f32[3,8,16,128], index: 1, kind: output, shape index: {}]  }
   0x1   :  { %18 = sst [smem:[#allocation4]] %s297_s6  ;;  %s299_s8 = smov 16  }
   0x2   :  { %20 = sst [smem:[#allocation4 + $0x1]] %s298_s7  ;;  %s25_s11 = scalar_lea.hbm %s407_s0, 512 }
   0x3   :  { %22 = sst [smem:[#allocation4 + $0x2]] %s299_s8  ;;  %s300_s12 = smov [#allocation2]  }
   0x4   :  { %s301_s13 = smov [#allocation3]   ;;  %s302_s14 = smov 0  }
   0x5   :  { %24 = dma.general %s407_s0, 768, %s408_s1, %s300_s12, %s301_s13, [#allocation4], %s302_s14, 0  }
   0x6   :  { %40 = sst [smem:[#allocation6]] %s297_s6  ;;  %s26_s21 = scalar_lea.hbm %s408_s1, 256 }
   0x7   :  { %42 = sst [smem:[#allocation6 + $0x1]] %s298_s7  ;;  %s303_s22 = smov [#allocation2 + $0x1]  }
   0x8   :  { %44 = sst [smem:[#allocation6 + $0x2]] %s299_s8  ;;  %s304_s23 = smov [#allocation5]  }
   0x9   :  { %46 = dma.general %s25_s11, 768, %s26_s21, %s303_s22, %s304_s23, [#allocation6], %s302_s14, 0  }
   0xa   :  { %62 = sst [smem:[#allocation8]] %s297_s6  ;;  %s47_s26 = scalar_lea.hbm %s407_s0, 1024 }
   0xb   :  { %64 = sst [smem:[#allocation8 + $0x1]] %s298_s7  ;;  %s48_s29 = scalar_lea.hbm %s408_s1, 512 }
   0xc   :  { %66 = sst [smem:[#allocation8 + $0x2]] %s299_s8  ;;  %s69_s3 = scalar_lea.hbm %s407_s0, 1536 }
   0xd   :  { %s305_s4 = smov [#allocation2 + $0x2]   ;;  %s306_s5 = smov [#allocation7]  }
   0xe   :  { %68 = dma.general %s47_s26, 768, %s48_s29, %s305_s4, %s306_s5, [#allocation8], %s302_s14, 0  }
   0xf   :  { %84 = sst [smem:[#allocation10]] %s297_s6  ;;  %s70_s11 = scalar_lea.hbm %s408_s1, 768 }
  0x10   :  { %86 = sst [smem:[#allocation10 + $0x1]] %s298_s7  ;;  %s307_s12 = smov [#allocation2 + $0x3]  }
  0x11   :  { %88 = sst [smem:[#allocation10 + $0x2]] %s299_s8  ;;  %s308_s13 = smov [#allocation9]  }
  0x12   :  { %90 = dma.general %s69_s3, 768, %s70_s11, %s307_s12, %s308_s13, [#allocation10], %s302_s14, 0  }
  0x13   :  { %106 = sst [smem:[#allocation12]] %s297_s6  ;;  %s91_s17 = scalar_lea.hbm %s407_s0, 2048 }
  0x14   :  { %108 = sst [smem:[#allocation12 + $0x1]] %s298_s7  ;;  %s92_s20 = scalar_lea.hbm %s408_s1, 1024 }
  0x15   :  { %110 = sst [smem:[#allocation12 + $0x2]] %s299_s8  ;;  %s113_s23 = scalar_lea.hbm %s407_s0, 2560 }
  0x16   :  { %s309_s24 = smov [#allocation2 + $0x4]   ;;  %s310_s25 = smov [#allocation11]  }
  0x17   :  { %112 = dma.general %s91_s17, 768, %s92_s20, %s309_s24, %s310_s25, [#allocation12], %s302_s14, 0  }
  0x18   :  { %128 = sst [smem:[#allocation14]] %s297_s6  ;;  %s114_s28 = scalar_lea.hbm %s408_s1, 1280 }
  0x19   :  { %130 = sst [smem:[#allocation14 + $0x1]] %s298_s7  ;;  %s311_s29 = smov [#allocation2 + $0x5]  }
  0x1a   :  { %132 = sst [smem:[#allocation14 + $0x2]] %s299_s8  ;;  %s312_s30 = smov [#allocation13]  }
  0x1b   :  { %134 = dma.general %s113_s23, 768, %s114_s28, %s311_s29, %s312_s30, [#allocation14], %s302_s14, 0  }
  0x1c   :  { %150 = sst [smem:[#allocation16]] %s297_s6  ;;  %s135_s4 = scalar_lea.hbm %s407_s0, 3072 }
  0x1d   :  { %152 = sst [smem:[#allocation16 + $0x1]] %s298_s7  ;;  %s136_s10 = scalar_lea.hbm %s408_s1, 1536 }
  0x1e   :  { %154 = sst [smem:[#allocation16 + $0x2]] %s299_s8  ;;  %s157_s13 = scalar_lea.hbm %s407_s0, 3840 }
  0x1f   :  { %s313_s15 = smov [#allocation2 + $0x6]   ;;  %s314_s16 = smov [#allocation15]  }
  0x20   :  { %156 = dma.general %s135_s4, 768, %s136_s10, %s313_s15, %s314_s16, [#allocation16], %s302_s14, 0  }
  0x21   :  { %172 = sst [smem:[#allocation18]] %s297_s6  ;;  %s158_s19 = scalar_lea.hbm %s408_s1, 1792 }
  0x22   :  { %174 = sst [smem:[#allocation18 + $0x1]] %s298_s7  ;;  %s315_s20 = smov [#allocation2 + $0x7]  }
  0x23   :  { %176 = sst [smem:[#allocation18 + $0x2]] %s299_s8  ;;  %s316_s21 = smov [#allocation17]  }
  0x24   :  { %178 = dma.general %s157_s13, 768, %s158_s19, %s315_s20, %s316_s21, [#allocation18], %s302_s14, 0  }
  0x25   :  { %281 = dma.done.wait [#allocation2], 768 }
  0x26   :  { %282 = vsyncadd [#allocation2], 4294966528 }
  0x27   :  { %283 = dma.done.wait [#allocation2 + $0x1], 768 }
  0x28   :  { %284 = vsyncadd [#allocation2 + $0x1], 4294966528 }
  0x29   :  { %285 = dma.done.wait [#allocation2 + $0x2], 768 }
  0x2a   :  { %286 = vsyncadd [#allocation2 + $0x2], 4294966528 }
  0x2b   :  { %287 = dma.done.wait [#allocation2 + $0x3], 768 }
  0x2c   :  { %288 = vsyncadd [#allocation2 + $0x3], 4294966528 }
  0x2d   :  { %289 = dma.done.wait [#allocation2 + $0x4], 768 }
  0x2e   :  { %290 = vsyncadd [#allocation2 + $0x4], 4294966528 }
  0x2f   :  { %291 = dma.done.wait [#allocation2 + $0x5], 768 }
  0x30   :  { %292 = vsyncadd [#allocation2 + $0x5], 4294966528 }
  0x31   :  { %293 = dma.done.wait [#allocation2 + $0x6], 768 }
  0x32   :  { %294 = vsyncadd [#allocation2 + $0x6], 4294966528 }
  0x33   :  { %295 = dma.done.wait [#allocation2 + $0x7], 768 }
  0x34   :  { %296 = vsyncadd [#allocation2 + $0x7], 4294966528 }
  0x35   :  { %198 = vsyncmov [#allocation2] }
  0x38   :  { %s199_s0 = vpop.sfrf %198 }
  0x39   :  { %p253_p0 = scmp.ne.s32.totalorder %s199_s0, 0 }
  0x3b   :  { %203 = shalt.err (%p253_p0)  }
  0x3c   :  { %205 = vsyncmov [#allocation2 + $0x1] }
  0x3f   :  { %s206_s1 = vpop.sfrf %205 }
  0x40   :  { %p254_p1 = scmp.ne.s32.totalorder %s206_s1, 0 }
  0x42   :  { %210 = shalt.err (%p254_p1)  }
  0x43   :  { %212 = vsyncmov [#allocation2 + $0x2] }
  0x46   :  { %s213_s6 = vpop.sfrf %212 }
  0x47   :  { %p255_p2 = scmp.ne.s32.totalorder %s213_s6, 0 }
  0x49   :  { %217 = shalt.err (%p255_p2)  }
  0x4a   :  { %219 = vsyncmov [#allocation2 + $0x3] }
  0x4d   :  { %s220_s7 = vpop.sfrf %219 }
  0x4e   :  { %p256_p3 = scmp.ne.s32.totalorder %s220_s7, 0 }
  0x50   :  { %224 = shalt.err (%p256_p3)  }
  0x51   :  { %226 = vsyncmov [#allocation2 + $0x4] }
  0x54   :  { %s227_s8 = vpop.sfrf %226 }
  0x55   :  { %p257_p4 = scmp.ne.s32.totalorder %s227_s8, 0 }
  0x57   :  { %231 = shalt.err (%p257_p4)  }
  0x58   :  { %233 = vsyncmov [#allocation2 + $0x5] }
  0x5b   :  { %s234_s14 = vpop.sfrf %233 }
  0x5c   :  { %p258_p5 = scmp.ne.s32.totalorder %s234_s14, 0 }
  0x5e   :  { %238 = shalt.err (%p258_p5)  }
  0x5f   :  { %240 = vsyncmov [#allocation2 + $0x6] }
  0x62   :  { %s241_s22 = vpop.sfrf %240 }
  0x63   :  { %p259_p6 = scmp.ne.s32.totalorder %s241_s22, 0 }
  0x65   :  { %245 = shalt.err (%p259_p6)  }
  0x66   :  { %247 = vsyncmov [#allocation2 + $0x7] }
  0x69   :  { %s248_s23 = vpop.sfrf %247 }
  0x6a   :  { %p260_p7 = scmp.ne.s32.totalorder %s248_s23, 0 }
  0x6c   :  { %252 = shalt.err (%p260_p7)  }

</bundles_post_ra>
